<compile_context>
chip_gen: v5e
topology: v5e:2x2
jax: 0.10.0
libtpu: 0.0.40
codegen_flags: <defaults>
</compile_context>

<pallas_src>
import math

import jax
import jax.numpy as jnp
from jax.experimental import pallas as pl
from jax.experimental.pallas import tpu as pltpu


def _wide_and_deep_kernel(dep_ref, attr_ref, table_ref, w_wide_ref,
                          w1_ref, b1_ref, w2_ref, b_out_ref, out_ref):
    """Fused WideAndDeep forward for one batch tile.

    dep_ref:    (bb, 1) int32  departure time-slot indices
    attr_ref:   (bb, 5) f32    continuous attributes
    table_ref:  (V, H)  f32    departure embedding table (VMEM-resident)
    w_wide_ref: (5, E)  f32    wide_fc weight (transposed vs PyTorch)
    w1_ref:     (H, E)  f32    deep_fc1 weight (transposed)
    b1_ref:     (1, E)  f32    deep_fc1 bias
    w2_ref:     (E, E)  f32    deep_fc2 weight (transposed)
    b_out_ref:  (1, E)  f32    wide_fc.bias + deep_fc2.bias (folded)
    out_ref:    (bb, E) f32
    """
    bb = dep_ref.shape[0]
    vocab = table_ref.shape[0]

    # Embedding gather as a one-hot matmul on the MXU: (bb, V) @ (V, H).
    # All shapes static -> no dynamic sublane indexing, robust on all gens.
    lane_ids = jax.lax.broadcasted_iota(jnp.int32, (bb, vocab), 1)
    onehot = (lane_ids == dep_ref[...]).astype(jnp.float32)
    emb = jnp.dot(onehot, table_ref[...], preferred_element_type=jnp.float32)

    # Deep path: relu(emb @ W1 + b1) @ W2, all in VMEM/vregs.
    h = jnp.dot(emb, w1_ref[...], preferred_element_type=jnp.float32)
    h = jnp.maximum(h + b1_ref[...], 0.0)
    deep = jnp.dot(h, w2_ref[...], preferred_element_type=jnp.float32)

    # Wide path: contraction length is only 5 (low MXU utilization), but it is
    # a single vmatmul push that co-issues with the VPU work above; at this
    # size it is cheaper than lane-broadcast FMAs on the VPU.
    wide = jnp.dot(attr_ref[...], w_wide_ref[...],
                   preferred_element_type=jnp.float32)

    # Lane-dense (bb, 128) store, both biases folded into b_out.
    out_ref[...] = (wide + deep + b_out_ref[...]).astype(out_ref.dtype)


def wide_and_deep_forward(attr, params, *, block_b=8):
    """attr: (B, 6) or (B, 1, 6); col 0 = departure index, cols 1:6 continuous."""
    a = jnp.squeeze(attr)                       # mirrors module's attr.squeeze()
    B = a.shape[0]
    dep = a[:, 0].astype(jnp.int32).reshape(B, 1)
    cont = a[:, 1:6].astype(jnp.float32)

    table = params["dep_table"]                 # (V, H)
    w_wide, b_wide = params["w_wide"], params["b_wide"]   # (5, E), (E,)
    w1, b1 = params["w1"], params["b1"]         # (H, E), (E,)
    w2, b2 = params["w2"], params["b2"]         # (E, E), (E,)

    V, H = table.shape
    E = w_wide.shape[1]

    # Pad batch to a multiple of block_b so every grid step sees a full tile.
    Bp = ((B + block_b - 1) // block_b) * block_b
    if Bp != B:
        dep = jnp.pad(dep, ((0, Bp - B), (0, 0)))
        cont = jnp.pad(cont, ((0, Bp - B), (0, 0)))

    b1_row = b1.reshape(1, E)
    b_out = (b_wide + b2).reshape(1, E)         # fold the two output-side biases

    out = pl.pallas_call(
        _wide_and_deep_kernel,
        out_shape=jax.ShapeDtypeStruct((Bp, E), jnp.float32),
        grid_spec=pl.GridSpec(
            grid=(Bp // block_b,),
            in_specs=[
                pl.BlockSpec((block_b, 1), lambda i: (i, 0)),   # dep idx
                pl.BlockSpec((block_b, 5), lambda i: (i, 0)),   # continuous
                pl.BlockSpec((V, H), lambda i: (0, 0)),         # emb table (resident)
                pl.BlockSpec((5, E), lambda i: (0, 0)),         # wide_fc W
                pl.BlockSpec((H, E), lambda i: (0, 0)),         # deep_fc1 W
                pl.BlockSpec((1, E), lambda i: (0, 0)),         # deep_fc1 b
                pl.BlockSpec((E, E), lambda i: (0, 0)),         # deep_fc2 W
                pl.BlockSpec((1, E), lambda i: (0, 0)),         # folded bias
            ],
            out_specs=pl.BlockSpec((block_b, E), lambda i: (i, 0)),
        ),
        compiler_params=pltpu.CompilerParams(
            dimension_semantics=("parallel",)),                 # megacore on v7x
    )(dep, cont, table, w_wide, w1, b1_row, w2, b_out)
    return out[:B]


def init_wide_and_deep_params(key, embedding_dim=128, hidden_dim=256,
                              n_depature=288):
    """PyTorch-style init. Linear weights stored transposed: (fan_in, fan_out)."""
    ks = jax.random.split(key, 7)

    def linear(kw, kb, fan_in, fan_out):
        bound = 1.0 / math.sqrt(fan_in)
        w = jax.random.uniform(kw, (fan_in, fan_out), minval=-bound,
                               maxval=bound, dtype=jnp.float32)
        b = jax.random.uniform(kb, (fan_out,), minval=-bound, maxval=bound,
                               dtype=jnp.float32)
        return w, b

    w_wide, b_wide = linear(ks[0], ks[1], 5, embedding_dim)
    w1, b1 = linear(ks[2], ks[3], hidden_dim, embedding_dim)
    w2, b2 = linear(ks[4], ks[5], embedding_dim, embedding_dim)
    dep_table = jax.random.normal(ks[6], (n_depature, hidden_dim),
                                  dtype=jnp.float32)
    # NOTE: sid_embedding / eid_embedding exist on the PyTorch module but are
    # never used in forward(), so they are intentionally omitted.
    return dict(w_wide=w_wide, b_wide=b_wide, w1=w1, b1=b1, w2=w2, b2=b2,
                dep_table=dep_table)


def _reference_forward(attr, params):
    """Pure-JAX reference for a correctness check."""
    a = jnp.squeeze(attr)
    dep = a[:, 0].astype(jnp.int32)
    cont = a[:, 1:6].astype(jnp.float32)
    wide = cont @ params["w_wide"] + params["b_wide"]
    emb = jnp.take(params["dep_table"], dep, axis=0)
    h = jax.nn.relu(emb @ params["w1"] + params["b1"])
    deep = h @ params["w2"] + params["b2"]
    return wide + deep


if __name__ == "__main__":
    B, E, H = 16, 128, 256   # embedding_dim=128, hidden_dim=256 (module defaults)

    key = jax.random.PRNGKey(0)
    key, k_idx, k_cont = jax.random.split(key, 3)
    dep_idx = jax.random.randint(k_idx, (B, 1), 0, 288)
    cont = jax.random.normal(k_cont, (B, 5), dtype=jnp.float32)
    # attr column 0 = departure slot index (as float, like the PyTorch input),
    # columns 1:6 = continuous attributes; singleton dim mirrors .squeeze().
    attr = jnp.concatenate([dep_idx.astype(jnp.float32), cont], axis=1)
    attr = attr.reshape(B, 1, 6)

    params = init_wide_and_deep_params(key, embedding_dim=E, hidden_dim=H)

    out = wide_and_deep_forward(attr, params)
    out = jax.block_until_ready(out)
    assert out.shape == (B, E)

    ref = _reference_forward(attr, params)
    max_err = float(jnp.max(jnp.abs(out - ref)))
    assert jnp.allclose(out, ref, atol=2e-3, rtol=2e-3), \
        f"mismatch vs reference, max abs err = {max_err}"

    print("KERNEL_OK")
</pallas_src>

<mosaic_0001>
module attributes {stable_mosaic.version = 11 : i64} {
  func.func @_wide_and_deep_kernel(%arg0: i32, %arg1: memref<8x1xi32, #tpu.memory_space<vmem>>, %arg2: memref<8x5xf32, #tpu.memory_space<vmem>>, %arg3: memref<288x256xf32, #tpu.memory_space<vmem>>, %arg4: memref<5x128xf32, #tpu.memory_space<vmem>>, %arg5: memref<256x128xf32, #tpu.memory_space<vmem>>, %arg6: memref<1x128xf32, #tpu.memory_space<vmem>>, %arg7: memref<128x128xf32, #tpu.memory_space<vmem>>, %arg8: memref<1x128xf32, #tpu.memory_space<vmem>>, %arg9: memref<8x128xf32, #tpu.memory_space<vmem>>) attributes {dimension_semantics = [#tpu.dimension_semantics<parallel>], iteration_bounds = array<i64: 2>, scalar_prefetch = 0 : i64, scratch_operands = 0 : i64, tpu.core_type = #tpu.core_type<tc>, window_params = [{transform_indices = @transform_0, window_bounds = array<i64: 8, 1>}, {transform_indices = @transform_1, window_bounds = array<i64: 8, 5>}, {pipeline_mode = #tpu.pipeline_mode<synchronous>, transform_indices = @transform_2, window_bounds = array<i64: 288, 256>}, {pipeline_mode = #tpu.pipeline_mode<synchronous>, transform_indices = @transform_3, window_bounds = array<i64: 5, 128>}, {pipeline_mode = #tpu.pipeline_mode<synchronous>, transform_indices = @transform_4, window_bounds = array<i64: 256, 128>}, {pipeline_mode = #tpu.pipeline_mode<synchronous>, transform_indices = @transform_5, window_bounds = array<i64: 1, 128>}, {pipeline_mode = #tpu.pipeline_mode<synchronous>, transform_indices = @transform_6, window_bounds = array<i64: 128, 128>}, {pipeline_mode = #tpu.pipeline_mode<synchronous>, transform_indices = @transform_7, window_bounds = array<i64: 1, 128>}, {transform_indices = @transform_8, window_bounds = array<i64: 8, 128>}]} {
    %0 = tpu.iota {dimensions = array<i32: 1>} : vector<8x288xi32>
    %c0 = arith.constant 0 : index
    %c0_0 = arith.constant 0 : index
    %1 = vector.load %arg1[%c0, %c0_0] : memref<8x1xi32, #tpu.memory_space<vmem>>, vector<8x1xi32>
    %2 = vector.broadcast %1 : vector<8x1xi32> to vector<8x288xi32>
    %3 = arith.cmpi eq, %0, %2 : vector<8x288xi32>
    %4 = arith.extui %3 : vector<8x288xi1> to vector<8x288xi32>
    %5 = arith.sitofp %4 : vector<8x288xi32> to vector<8x288xf32>
    %c0_1 = arith.constant 0 : index
    %c0_2 = arith.constant 0 : index
    %6 = vector.load %arg3[%c0_1, %c0_2] : memref<288x256xf32, #tpu.memory_space<vmem>>, vector<288x256xf32>
    %cst = arith.constant dense<0.000000e+00> : vector<8x256xf32>
    %7 = tpu.matmul %5, %6, %cst {dimension_numbers = #tpu.dot_dimension_numbers<[1], [0], [0], [1], [0, 0, 1, 1], [], []>} : vector<8x288xf32>, vector<288x256xf32>, vector<8x256xf32> -> vector<8x256xf32>
    %c0_3 = arith.constant 0 : index
    %c0_4 = arith.constant 0 : index
    %8 = vector.load %arg5[%c0_3, %c0_4] : memref<256x128xf32, #tpu.memory_space<vmem>>, vector<256x128xf32>
    %cst_5 = arith.constant dense<0.000000e+00> : vector<8x128xf32>
    %9 = tpu.matmul %7, %8, %cst_5 {dimension_numbers = #tpu.dot_dimension_numbers<[1], [0], [0], [1], [0, 0, 1, 1], [], []>} : vector<8x256xf32>, vector<256x128xf32>, vector<8x128xf32> -> vector<8x128xf32>
    %c0_6 = arith.constant 0 : index
    %c0_7 = arith.constant 0 : index
    %10 = vector.load %arg6[%c0_6, %c0_7] : memref<1x128xf32, #tpu.memory_space<vmem>>, vector<1x128xf32>
    %11 = vector.broadcast %10 : vector<1x128xf32> to vector<8x128xf32>
    %12 = arith.addf %9, %11 : vector<8x128xf32>
    %cst_8 = arith.constant 0.000000e+00 : f32
    %13 = vector.broadcast %cst_8 : f32 to vector<8x128xf32>
    %14 = arith.maximumf %12, %13 : vector<8x128xf32>
    %c0_9 = arith.constant 0 : index
    %c0_10 = arith.constant 0 : index
    %15 = vector.load %arg7[%c0_9, %c0_10] : memref<128x128xf32, #tpu.memory_space<vmem>>, vector<128x128xf32>
    %cst_11 = arith.constant dense<0.000000e+00> : vector<8x128xf32>
    %16 = tpu.matmul %14, %15, %cst_11 {dimension_numbers = #tpu.dot_dimension_numbers<[1], [0], [0], [1], [0, 0, 1, 1], [], []>} : vector<8x128xf32>, vector<128x128xf32>, vector<8x128xf32> -> vector<8x128xf32>
    %c0_12 = arith.constant 0 : index
    %c0_13 = arith.constant 0 : index
    %17 = vector.load %arg2[%c0_12, %c0_13] : memref<8x5xf32, #tpu.memory_space<vmem>>, vector<8x5xf32>
    %c0_14 = arith.constant 0 : index
    %c0_15 = arith.constant 0 : index
    %18 = vector.load %arg4[%c0_14, %c0_15] : memref<5x128xf32, #tpu.memory_space<vmem>>, vector<5x128xf32>
    %cst_16 = arith.constant dense<0.000000e+00> : vector<8x128xf32>
    %19 = tpu.matmul %17, %18, %cst_16 {dimension_numbers = #tpu.dot_dimension_numbers<[1], [0], [0], [1], [0, 0, 1, 1], [], []>} : vector<8x5xf32>, vector<5x128xf32>, vector<8x128xf32> -> vector<8x128xf32>
    %20 = arith.addf %19, %16 : vector<8x128xf32>
    %c0_17 = arith.constant 0 : index
    %c0_18 = arith.constant 0 : index
    %21 = vector.load %arg8[%c0_17, %c0_18] : memref<1x128xf32, #tpu.memory_space<vmem>>, vector<1x128xf32>
    %22 = vector.broadcast %21 : vector<1x128xf32> to vector<8x128xf32>
    %23 = arith.addf %20, %22 : vector<8x128xf32>
    %c0_19 = arith.constant 0 : index
    %c0_20 = arith.constant 0 : index
    %24 = vector.load %arg9[%c0_19, %c0_20] : memref<8x128xf32, #tpu.memory_space<vmem>>, vector<8x128xf32>
    tpu.vector_store %arg9[%c0_19, %c0_20], %23 {strides = array<i32>} : memref<8x128xf32, #tpu.memory_space<vmem>>, vector<8x128xf32>,
    return
  }
  func.func @transform_0(%arg0: i32) -> (i32, i32) {
    %c0_i32 = arith.constant 0 : i32
    %c0_i32_0 = arith.constant 0 : i32
    return %arg0, %c0_i32 : i32, i32
  }
  func.func @transform_1(%arg0: i32) -> (i32, i32) {
    %c0_i32 = arith.constant 0 : i32
    %c0_i32_0 = arith.constant 0 : i32
    return %arg0, %c0_i32 : i32, i32
  }
  func.func @transform_2(%arg0: i32) -> (i32, i32) {
    %c0_i32 = arith.constant 0 : i32
    %c0_i32_0 = arith.constant 0 : i32
    %c0_i32_1 = arith.constant 0 : i32
    return %c0_i32, %c0_i32_0 : i32, i32
  }
  func.func @transform_3(%arg0: i32) -> (i32, i32) {
    %c0_i32 = arith.constant 0 : i32
    %c0_i32_0 = arith.constant 0 : i32
    %c0_i32_1 = arith.constant 0 : i32
    return %c0_i32, %c0_i32_0 : i32, i32
  }
  func.func @transform_4(%arg0: i32) -> (i32, i32) {
    %c0_i32 = arith.constant 0 : i32
    %c0_i32_0 = arith.constant 0 : i32
    %c0_i32_1 = arith.constant 0 : i32
    return %c0_i32, %c0_i32_0 : i32, i32
  }
  func.func @transform_5(%arg0: i32) -> (i32, i32) {
    %c0_i32 = arith.constant 0 : i32
    %c0_i32_0 = arith.constant 0 : i32
    %c0_i32_1 = arith.constant 0 : i32
    return %c0_i32, %c0_i32_0 : i32, i32
  }
  func.func @transform_6(%arg0: i32) -> (i32, i32) {
    %c0_i32 = arith.constant 0 : i32
    %c0_i32_0 = arith.constant 0 : i32
    %c0_i32_1 = arith.constant 0 : i32
    return %c0_i32, %c0_i32_0 : i32, i32
  }
  func.func @transform_7(%arg0: i32) -> (i32, i32) {
    %c0_i32 = arith.constant 0 : i32
    %c0_i32_0 = arith.constant 0 : i32
    %c0_i32_1 = arith.constant 0 : i32
    return %c0_i32, %c0_i32_0 : i32, i32
  }
  func.func @transform_8(%arg0: i32) -> (i32, i32) {
    %c0_i32 = arith.constant 0 : i32
    %c0_i32_0 = arith.constant 0 : i32
    return %arg0, %c0_i32 : i32, i32
  }
}

</mosaic_0001>

<bundles_post_ra>
// kernel: tpu_custom_call.1
= control target key start
LH: loop header
LB: loop body
LE: loop exit
PB: predicated region body
PF: predicated region fallthrough
CT: control target
= control target key end

     0   :  { %s1319_s0 = inlined_call_operand.vmem [shape: s32[16,1], index: 0, kind: input, shape index: {}]   ;;  %s1320_s1 = inlined_call_operand.vmem [shape: f32[16,5], index: 1, kind: input, shape index: {}]   ;;  %s1321_s2 = inlined_call_operand.hbm [shape: f32[288,256], index: 2, kind: input, shape index: {}]   ;;  %s1322_s3 = inlined_call_operand.vmem [shape: f32[5,128], index: 3, kind: input, shape index: {}]   ;;  %s1323_s4 = inlined_call_operand.hbm [shape: f32[256,128], index: 4, kind: input, shape index: {}]   ;;  %s1324_s5 = inlined_call_operand.vmem [shape: f32[1,128], index: 5, kind: input, shape index: {}]   ;;  %s1325_s6 = inlined_call_operand.hbm [shape: f32[128,128], index: 6, kind: input, shape index: {}]   ;;  %s1326_s7 = inlined_call_operand.vmem [shape: f32[1,128], index: 7, kind: input, shape index: {}]   ;;  %s1327_s8 = inlined_call_operand.hbm [shape: f32[16,128], index: 8, kind: output, shape index: {}]  }
   0x1   :  { %1328 = sst [smem:[#allocation13_spill]] %s1321_s2 }
   0x2   :  { %1329 = sst [smem:[#allocation14_spill]] %s1323_s4 }
   0x3   :  { %13 = vsyncpa [#allocation3], 0 }
   0x4   :  { %14 = vsyncpa [#allocation6], 0 }
   0x5   :  { %15 = vsyncpa [#allocation4], 0 }
   0x6   :  { %17 = vsyncpa [#allocation4 + $0x1], 0  ;;  %s1173_s27 = smov 0   ;;  %s1175_s28 = smov 0  }
   0x7   :  { %s1177_s29 = smov 0   ;;  %s1179_s30 = smov 0  }
   0x8 LB: > { %s1194_s9 = sadd.s32 4294967295, %s1116_s30   ;;  %s848_s10 = sadd.s32 4294967294, %s1116_s30   ;;  %s1116_s30 = sphi %s1179_s30, %s1341_s30   ;;  %s1112_s29 = sphi %s1177_s29, %s1340_s29   ;;  %s1108_s28 = sphi %s1175_s28, %s1339_s28   ;;  %s1104_s27 = sphi %s1173_s27, %s1338_s27  }
   0x9   : > { %s1198_s11 = sadd.s32 1, %s1116_s30   ;;  %s208_s12 = sadd.s32 1, %s1112_s29 }
   0xa   : > { %s205_s13 = ssub.s32 %s1116_s30, %s1198_s11  ;;  %p218_p0 = scmp.ne.s32.totalorder %s1112_s29, %s1108_s28 }
   0xb   : > { %p206_p1 = scmp.eq.s32.totalorder %s205_s13, 0  ;;  %p219_p2 = scmp.eq.s32.totalorder %s1194_s9, 1 }
   0xc   : > { %p224_p3 = scmp.ne.s32.totalorder %s1108_s28, %s1104_s27  ;;  %p225_p4 = scmp.eq.s32.totalorder %s848_s10, 1 }
   0xd   : > { %s1209_s14 = scalar_select %p206_p1, %s1112_s29, %s208_s12  }
   0xe   : > { %p1211_p5 = por %p219_p2, %p218_p0  ;;  %p1215_p6 = por %p225_p4, %p224_p3 }
   0xf   : > { %1330 = sst [smem:[#allocation12_spill]] %s1209_s14  ;;  %p849_p7 = scmp.ge.s32.totalorder %s1116_s30, 1 }
  0x10   : > { %p232_p8 = scmp.lt.s32.totalorder %s1116_s30, 3  ;;  %p904_p9 = scmp.eq.s32.totalorder %s1194_s9, 0 }
  0x11   : > { %s1334_s4 = sld [smem:[#allocation14_spill]]  ;;  %s1118_s21 = smov [#allocation5]  }
  0x12   : > { %p1222_p10 = pnand %p849_p7, %p232_p8  ;;  %s262_s22 = sshll.u32 %s1118_s21, 4  ;;  %s263_s22 = int_to_ptr.vmem [resolvable:$true] %s262_s22 }
  0x13   : > { %s1336_s2 = sld [smem:[#allocation13_spill]]  ;;  %s1119_s10 = smov 128  }
  0x14   : > { %p890_p11 = pneg %p1222_p10  ;;  %s1120_s12 = smov 8  }
  0x15   : > { %s1121_s13 = smov [#allocation2]   ;;  %s1122_s19 = smov 256  }
  0x16   : > { %p1233_p12 = pnand %p904_p9, %p890_p11  ;;  %s245_s18 = sshll.u32 %s1121_s13, 4  ;;  %s246_s18 = int_to_ptr.vmem [resolvable:$true] %s245_s18 }
  0x17   : > { %s260_s20 = sshll.u32 %s1334_s4, 4  ;;  %s1123_s21 = smov 16   ;;  %s261_s20 = int_to_ptr.hbm [resolvable:$true] %s260_s20 }
  0x18   : > { %896 = dma.hbm_to_vmem [thread:$0]  (!%p1233_p12), %s261_s20, 4096, %s263_s22, [#allocation6], %s1119_s10, %s1119_s10, %s1120_s12  }
  0x19   : > { %s243_s26 = sshll.u32 %s1336_s2, 4  ;;  %s277_s24 = sshll.u32 %s1325_s6, 4  ;;  %s244_s26 = int_to_ptr.hbm [resolvable:$true] %s243_s26  ;;  %s278_s24 = int_to_ptr.hbm [resolvable:$true] %s277_s24 }
  0x1a   : > { %893 = dma.hbm_to_vmem [thread:$0]  (!%p1233_p12), %s244_s26, 9216, %s246_s18, [#allocation3], %s1122_s19, %s1122_s19, %s1123_s21  }
  0x1b   : > { %s1124_s25 = smov [#allocation7]   ;;  %312 = sbr.rel (%p1222_p10) target bundleno = 578 (0x242), region = 52 }
  0x1c   : > { %s279_s2 = sshll.u32 %s1124_s25, 4  ;;  %s280_s2 = int_to_ptr.vmem [resolvable:$true] %s279_s2 }
  0x1d   : > { %899 = dma.hbm_to_vmem [thread:$0]  (!%p1233_p12), %s278_s24, 2048, %s280_s2, [#allocation6], %s1119_s10, %s1119_s10, %s1120_s12  }
  0x20   : > { %1091 = dma.done.wait (%p904_p9), [#allocation3], 9216  }
  0x21   : > { %1093 = vsyncadd (%p904_p9), [#allocation3], 4294958080 }
  0x22   : > { %1095 = dma.done.wait (%p904_p9), [#allocation6], 6144  }
  0x23   : > { %1097 = vsyncadd (%p904_p9), [#allocation6], 4294961152  ;;  %p360_p13 = scmp.lt.s32.totalorder %s1194_s9, 1  ;;  %v1125_v0 = vmov 0   ;;  %v415_v2 = vld [vmem:[#allocation2 + $0xf0] sm:$0xff]  ;;  %v416_v4 = vld [vmem:[#allocation2 + $0xf8] sm:$0xff] }
  0x24   : > { %953 = vset.pattern.permute.xlu0 %v1125_v0  ;;  %461 = vmatpush.msra.mxu0 %v415_v2  ;;  %v447_v3 = vld [vmem:[#allocation2 + $0x1f0] sm:$0xff]  ;;  %v413_v5 = vld [vmem:[#allocation2 + $0xe0] sm:$0xff]  ;;  %v414_v8 = vld [vmem:[#allocation2 + $0xe8] sm:$0xff]  ;;  %vm457_vm0 = vcmask 261120   ;;  %vm700_vm4 = vcmask 1044480   ;;  %vm696_vm5 = vcmask 39936  }
  0x25   : > { %s1261_s2 = scalar_select %p360_p13, %s1194_s9, 1  ;;  %481 = vmatpush.msra.mxu1 %v447_v3  ;;  %521 = vmatpush.msra.mxu3 %v416_v4  ;;  %v445_v6 = vld [vmem:[#allocation2 + $0x1e0] sm:$0xff]  ;;  %v455_v7 = vld [vmem:[#allocation2 + $0x230] sm:$0xff]  ;;  %v412_v12 = vld [vmem:[#allocation2 + $0xd8] sm:$0xff] }
  0x26   : > { %462 = vmatpush.msra.mxu0 %v413_v5  ;;  %513 = vmatpush.msra.mxu2 %v455_v7  ;;  %v411_v9 = vld [vmem:[#allocation2 + $0xd0] sm:$0xff]  ;;  %v453_v11 = vld [vmem:[#allocation2 + $0x220] sm:$0xff]  ;;  %v410_v16 = vld [vmem:[#allocation2 + $0xc8] sm:$0xff]  ;;  %s357_s19 = sand.u32 1, %s1108_s28   ;;  %s873_s24 = sshll.u32 %s1194_s9, 3 }
  0x27   : > { %s859_s4 = sshll.u32 %s1261_s2, 3  ;;  %v443_v10 = vld [vmem:[#allocation2 + $0x1d0] sm:$0xff]  ;;  %482 = vmatpush.msra.mxu1 %v445_v6  ;;  %522 = vmatpush.msra.mxu3 %v414_v8  ;;  %v409_v13 = vld [vmem:[#allocation2 + $0xc0] sm:$0xff]  ;;  %v408_v20 = vld [vmem:[#allocation2 + $0xb8] sm:$0xff]  ;;  %v368_v8 = vlaneseq  ;;  %s858_s21 = sshll.u32 %s357_s19, 3 }
  0x28   : > { %s363_s20 = scalar_lea.vmem %s1319_s0, %s859_s4  ;;  %463 = vmatpush.msra.mxu0 %v411_v9  ;;  %514 = vmatpush.msra.mxu2 %v453_v11  ;;  %v441_v14 = vld [vmem:[#allocation2 + $0x1c0] sm:$0xff]  ;;  %v451_v15 = vld [vmem:[#allocation2 + $0x210] sm:$0xff]  ;;  %v448_v21 = vld [vmem:[#allocation2 + $0x1f8] sm:$0xff]  ;;  %s367_s26 = scalar_lea.vmem %s1320_s1, %s859_s4 }
  0x29   : > { %v372_v1 = vld [vmem:[%s363_s20] sm:$0xff]  ;;  %483 = vmatpush.msra.mxu1 %v443_v10  ;;  %523 = vmatpush.msra.mxu3 %v412_v12  ;;  %v407_v17 = vld [vmem:[#allocation2 + $0xb0] sm:$0xff]  ;;  %v406_v24 = vld [vmem:[#allocation2 + $0xa8] sm:$0xff]  ;;  %s741_s4 = scalar_lea.hbm %s1327_s8, %s873_s24  ;;  %s359_s20 = scalar_lea.vmem [#allocation8], %s858_s21 }
  0x2a   : > { %374 = vperm.xlu0 %953, %v372_v1   ;;  %v449_v18 = vld [vmem:[#allocation2 + $0x200] sm:$0xff]  ;;  %464 = vmatpush.msra.mxu0 %v409_v13  ;;  %v439_v19 = vld [vmem:[#allocation2 + $0x1b0] sm:$0xff]  ;;  %v446_v25 = vld [vmem:[#allocation2 + $0x1e8] sm:$0xff]  ;;  %s743_s22 = sshll.u32 %s359_s20, 4  ;;  %s745_s23 = sshll.u32 %s741_s4, 4  ;;  %s744_s22 = int_to_ptr.vmem [resolvable:$true] %s743_s22  ;;  %s746_s23 = int_to_ptr.hbm [resolvable:$true] %s745_s23 }
  0x2b   : > { %515 = vmatpush.msra.mxu2 %v451_v15  ;;  %484 = vmatpush.msra.mxu1 %v441_v14  ;;  %v405_v22 = vld [vmem:[#allocation2 + $0xa0] sm:$0xff]  ;;  %v403_v26 = vld [vmem:[#allocation2 + $0x90] sm:$0xff]  ;;  %v404_v28 = vld [vmem:[#allocation2 + $0x98] sm:$0xff]  ;;  %v369_v14 = vand.u32 127, %v368_v8  ;;  %s731_s9 = scalar_lea.sflag [#allocation4], %s357_s19  ;;  %s1066_s18 = scalar_lea.hbm %s1327_s8, 16 }
  0x2c   : > { %524 = vmatpush.msra.mxu3 %v410_v16  ;;  %465 = vmatpush.msra.mxu0 %v407_v17  ;;  %v437_v23 = vld [vmem:[#allocation2 + $0x1a0] sm:$0xff]  ;;  %v435_v27 = vld [vmem:[#allocation2 + $0x190] sm:$0xff]  ;;  %v444_v29 = vld [vmem:[#allocation2 + $0x1d8] sm:$0xff] }
  0x2d   : > { %516 = vmatpush.msra.mxu2 %v449_v18  ;;  %485 = vmatpush.msra.mxu1 %v439_v19  ;;  %v401_v30 = vld [vmem:[#allocation2 + $0x80] sm:$0xff]  ;;  %v402_v32 = vld [vmem:[#allocation2 + $0x88] sm:$0xff]  ;;  %v399_v34 = vld [vmem:[#allocation2 + $0x70] sm:$0xff]  ;;  %v371_v17 = vadd.s32 256, %v369_v14  ;;  %v370_v18 = vadd.s32 128, %v369_v14 }
  0x2e   : > { %525 = vmatpush.msra.mxu3 %v408_v20  ;;  %466 = vmatpush.msra.mxu0 %v405_v22  ;;  %v433_v31 = vld [vmem:[#allocation2 + $0x180] sm:$0xff]  ;;  %v442_v33 = vld [vmem:[#allocation2 + $0x1c8] sm:$0xff]  ;;  %v431_v35 = vld [vmem:[#allocation2 + $0x170] sm:$0xff] }
  0x2f   : > { %541 = vmatpush.msrb.mxu2 %v448_v21  ;;  %486 = vmatpush.msra.mxu1 %v437_v23  ;;  %v400_v36 = vld [vmem:[#allocation2 + $0x78] sm:$0xff]  ;;  %v397_v38 = vld [vmem:[#allocation2 + $0x60] sm:$0xff]  ;;  %v398_v40 = vld [vmem:[#allocation2 + $0x68] sm:$0xff]  ;;  %v1126_v23 = vmov 1.0  }
  0x30   : > { %526 = vmatpush.msra.mxu3 %v406_v24  ;;  %467 = vmatpush.msra.mxu0 %v403_v26  ;;  %v440_v37 = vld [vmem:[#allocation2 + $0x1b8] sm:$0xff]  ;;  %v429_v39 = vld [vmem:[#allocation2 + $0x160] sm:$0xff]  ;;  %v438_v41 = vld [vmem:[#allocation2 + $0x1a8] sm:$0xff]  ;;  %v1127_v24 = vmov 0.0  }
  0x31   : > { %542 = vmatpush.msrb.mxu2 %v446_v25  ;;  %487 = vmatpush.msra.mxu1 %v435_v27  ;;  %v395_v42 = vld [vmem:[#allocation2 + $0x50] sm:$0xff]  ;;  %v396_v44 = vld [vmem:[#allocation2 + $0x58] sm:$0xff]  ;;  %v393_v46 = vld [vmem:[#allocation2 + $0x40] sm:$0xff] }
  0x32   : > { %527 = vmatpush.msra.mxu3 %v404_v28  ;;  %468 = vmatpush.msra.mxu0 %v401_v30  ;;  %v427_v43 = vld [vmem:[#allocation2 + $0x150] sm:$0xff]  ;;  %v436_v45 = vld [vmem:[#allocation2 + $0x198] sm:$0xff]  ;;  %v425_v47 = vld [vmem:[#allocation2 + $0x140] sm:$0xff] }
  0x33   : > { %543 = vmatpush.msrb.mxu2 %v444_v29  ;;  %488 = vmatpush.msra.mxu1 %v433_v31  ;;  %v394_v48 = vld [vmem:[#allocation2 + $0x48] sm:$0xff]  ;;  %v391_v50 = vld [vmem:[#allocation2 + $0x30] sm:$0xff]  ;;  %v392_v52 = vld [vmem:[#allocation2 + $0x38] sm:$0xff] }
  0x34   : > { %528 = vmatpush.msra.mxu3 %v402_v32  ;;  %469 = vmatpush.msra.mxu0 %v399_v34  ;;  %v434_v49 = vld [vmem:[#allocation2 + $0x188] sm:$0xff]  ;;  %v423_v51 = vld [vmem:[#allocation2 + $0x130] sm:$0xff]  ;;  %v432_v53 = vld [vmem:[#allocation2 + $0x178] sm:$0xff] }
  0x35   : > { %544 = vmatpush.msrb.mxu2 %v442_v33  ;;  %489 = vmatpush.msra.mxu1 %v431_v35  ;;  %v389_v54 = vld [vmem:[#allocation2 + $0x20] sm:$0xff]  ;;  %v390_v56 = vld [vmem:[#allocation2 + $0x28] sm:$0xff]  ;;  %v387_v58 = vld [vmem:[#allocation2 + $0x10] sm:$0xff] }
  0x36   : > { %529 = vmatpush.msra.mxu3 %v400_v36  ;;  %470 = vmatpush.msra.mxu0 %v397_v38  ;;  %v421_v55 = vld [vmem:[#allocation2 + $0x120] sm:$0xff]  ;;  %v430_v57 = vld [vmem:[#allocation2 + $0x168] sm:$0xff]  ;;  %v419_v59 = vld [vmem:[#allocation2 + $0x110] sm:$0xff] }
  0x37   : > { %545 = vmatpush.msrb.mxu2 %v440_v37  ;;  %490 = vmatpush.msra.mxu1 %v429_v39  ;;  %v388_v60 = vld [vmem:[#allocation2 + $0x18] sm:$0xff]  ;;  %v385_v62 = vld [vmem:[#allocation2] sm:$0xff]  ;;  %v386_v0 = vld [vmem:[#allocation2 + $0x8] sm:$0xff] }
  0x38   : > { %530 = vmatpush.msra.mxu3 %v398_v40  ;;  %471 = vmatpush.msra.mxu0 %v395_v42  ;;  %v428_v61 = vld [vmem:[#allocation2 + $0x158] sm:$0xff]  ;;  %v417_v63 = vld [vmem:[#allocation2 + $0x100] sm:$0xff]  ;;  %v426_v1 = vld [vmem:[#allocation2 + $0x148] sm:$0xff] }
  0x39   : > { %546 = vmatpush.msrb.mxu2 %v438_v41  ;;  %491 = vmatpush.msra.mxu1 %v427_v43  ;;  %v424_v2 = vld [vmem:[#allocation2 + $0x138] sm:$0xff]  ;;  %v422_v3 = vld [vmem:[#allocation2 + $0x128] sm:$0xff]  ;;  %v595_v7 = vld [vmem:[#allocation5 + $0x70] sm:$0xff] }
  0x3a   : > { %531 = vmatpush.msra.mxu3 %v396_v44  ;;  %472 = vmatpush.msra.mxu0 %v393_v46  ;;  %v420_v4 = vld [vmem:[#allocation2 + $0x118] sm:$0xff]  ;;  %v418_v5 = vld [vmem:[#allocation2 + $0x108] sm:$0xff]  ;;  %v611_v11 = vld [vmem:[#allocation5 + $0xf0] sm:$0xff] }
  0x3b   : > { %547 = vmatpush.msrb.mxu2 %v436_v45  ;;  %492 = vmatpush.msra.mxu1 %v425_v47  ;;  %v596_v6 = vld [vmem:[#allocation5 + $0x78] sm:$0xff]  ;;  %v594_v9 = vld [vmem:[#allocation5 + $0x68] sm:$0xff]  ;;  %v593_v12 = vld [vmem:[#allocation5 + $0x60] sm:$0xff] }
  0x3c   : > { %532 = vmatpush.msra.mxu3 %v394_v48  ;;  %473 = vmatpush.msra.mxu0 %v391_v50  ;;  %v612_v10 = vld [vmem:[#allocation5 + $0xf8] sm:$0xff]  ;;  %v610_v13 = vld [vmem:[#allocation5 + $0xe8] sm:$0xff]  ;;  %v591_v16 = vld [vmem:[#allocation5 + $0x50] sm:$0xff] }
  0x3d   : > { %548 = vmatpush.msrb.mxu2 %v434_v49  ;;  %493 = vmatpush.msra.mxu1 %v423_v51  ;;  %v592_v15 = vld [vmem:[#allocation5 + $0x58] sm:$0xff]  ;;  %v590_v19 = vld [vmem:[#allocation5 + $0x48] sm:$0xff]  ;;  %v589_v22 = vld [vmem:[#allocation5 + $0x40] sm:$0xff] }
  0x3e   : > { %533 = vmatpush.msra.mxu3 %v392_v52  ;;  %474 = vmatpush.msra.mxu0 %v389_v54  ;;  %v456_v21 = vld [vmem:[#allocation2 + $0x238] sm:$0xff]  ;;  %v454_v26 = vld [vmem:[#allocation2 + $0x228] sm:$0xff]  ;;  %v587_v29 = vld [vmem:[#allocation5 + $0x30] sm:$0xff] }
  0x3f   : > { %549 = vmatpush.msrb.mxu2 %v432_v53  ;;  %494 = vmatpush.msra.mxu1 %v421_v55  ;;  %v588_v27 = vld [vmem:[#allocation5 + $0x38] sm:$0xff]  ;;  %v450_v30 = vld [vmem:[#allocation2 + $0x208] sm:$0xff]  ;;  %v585_v32 = vld [vmem:[#allocation5 + $0x20] sm:$0xff] }
  0x40   : > { %534 = vmatpush.msra.mxu3 %v390_v56  ;;  %475 = vmatpush.msra.mxu0 %v387_v58  ;;  %v452_v28 = vld [vmem:[#allocation2 + $0x218] sm:$0xff]  ;;  %v586_v31 = vld [vmem:[#allocation5 + $0x28] sm:$0xff]  ;;  %v609_v33 = vld [vmem:[#allocation5 + $0xe0] sm:$0xff] }
  0x41   : > { %550 = vmatpush.msrb.mxu2 %v430_v57  ;;  %495 = vmatpush.msra.mxu1 %v419_v59  ;;  %v584_v34 = vld [vmem:[#allocation5 + $0x18] sm:$0xff]  ;;  %v583_v36 = vld [vmem:[#allocation5 + $0x10] sm:$0xff]  ;;  %v582_v38 = vld [vmem:[#allocation5 + $0x8] sm:$0xff] }
  0x42   : > { %535 = vmatpush.msra.mxu3 %v388_v60  ;;  %476 = vmatpush.msra.mxu0 %v385_v62  ;;  %v608_v35 = vld [vmem:[#allocation5 + $0xd8] sm:$0xff]  ;;  %v607_v37 = vld [vmem:[#allocation5 + $0xd0] sm:$0xff]  ;;  %v606_v39 = vld [vmem:[#allocation5 + $0xc8] sm:$0xff] }
  0x43   : > { %551 = vmatpush.msrb.mxu2 %v428_v61  ;;  %496 = vmatpush.msra.mxu1 %v417_v63  ;;  %v581_v40 = vld [vmem:[#allocation5] sm:$0xff]  ;;  %v604_v42 = vld [vmem:[#allocation5 + $0xb8] sm:$0xff]  ;;  %v603_v43 = vld [vmem:[#allocation5 + $0xb0] sm:$0xff] }
  0x44   : > { %536 = vmatpush.msra.mxu3 %v386_v0  ;;  %v605_v41 = vld [vmem:[#allocation5 + $0xc0] sm:$0xff]  ;;  %v602_v44 = vld [vmem:[#allocation5 + $0xa8] sm:$0xff]  ;;  %v600_v46 = vld [vmem:[#allocation5 + $0x98] sm:$0xff] }
  0x45   : > { %552 = vmatpush.msrb.mxu2 %v426_v1  ;;  %617 = vmatpush.msrb.mxu1 %v596_v6  ;;  %v601_v45 = vld [vmem:[#allocation5 + $0xa0] sm:$0xff]  ;;  %v599_v47 = vld [vmem:[#allocation5 + $0x90] sm:$0xff]  ;;  %v598_v48 = vld [vmem:[#allocation5 + $0x88] sm:$0xff] }
  0x46   : > { %637 = vmatpush.msrb.mxu3 %v612_v10  ;;  %v597_v49 = vld [vmem:[#allocation5 + $0x80] sm:$0xff]  ;;  %v673_v50 = vld [vmem:[#allocation7 + $0x78] sm:$0xff]  ;;  %v672_v51 = vld [vmem:[#allocation7 + $0x70] sm:$0xff] }
  0x47   : > { %553 = vmatpush.msrb.mxu2 %v424_v2  ;;  %618 = vmatpush.msrb.mxu1 %v595_v7  ;;  %v671_v62 = vld [vmem:[#allocation7 + $0x68] sm:$0xff]  ;;  %v670_v63 = vld [vmem:[#allocation7 + $0x60] sm:$0xff]  ;;  %v669_v1 = vld [vmem:[#allocation7 + $0x58] sm:$0xff] }
  0x48   : > { %638 = vmatpush.msrb.mxu3 %v611_v11  ;;  %674 = vmatpush.msrb.mxu0 %v673_v50  ;;  %v694_v0 = vld [vmem:[%s367_s26] sm:$0xff]  ;;  %v665_v6 = vld [vmem:[#allocation7 + $0x38] sm:$0xff]  ;;  %v664_v7 = vld [vmem:[#allocation7 + $0x30] sm:$0xff]  ;;  %s1060_s26 = sshra.s32 %s746_s23, 4  ;;  %s1061_s26 = int_to_ptr.hbm [resolvable:$true] %s1060_s26 }
  0x49   : > { %554 = vmatpush.msrb.mxu2 %v422_v3  ;;  %619 = vmatpush.msrb.mxu1 %v594_v9  ;;  %v695_v2 = vld [vmem:[%s1322_s3] sm:$0x1f]  ;;  %v668_v3 = vld [vmem:[#allocation7 + $0x50] sm:$0xff]  ;;  %v663_v8 = vld [vmem:[#allocation7 + $0x28] sm:$0xff]  ;;  %s1062_s10 = scalar_lea.hbm %s1061_s26, 8  ;;  %p1067_p3 = scmp.lt.s32.totalorder %s1061_s26, %s1327_s8 }
  0x4a   : > { %639 = vmatpush.msrb.mxu3 %v610_v13  ;;  %675 = vmatpush.msrb.mxu0 %v672_v51  ;;  %v662_v9 = vld [vmem:[#allocation7 + $0x20] sm:$0xff]  ;;  %v661_v10 = vld [vmem:[#allocation7 + $0x18] sm:$0xff]  ;;  %v660_v11 = vld [vmem:[#allocation7 + $0x10] sm:$0xff]  ;;  %p1063_p0 = scmp.ne.s32.totalorder %s1061_s26, %s1062_s10  ;;  %p1068_p4 = scmp.lt.s32.totalorder %s1066_s18, %s1062_s10 }
  0x4b   : > { %555 = vmatpush.msrb.mxu2 %v420_v4  ;;  %620 = vmatpush.msrb.mxu1 %v593_v12  ;;  %v667_v4 = vld [vmem:[#allocation7 + $0x48] sm:$0xff]  ;;  %v658_v13 = vld [vmem:[#allocation7] sm:$0xff] }
  0x4c   : > { %640 = vmatpush.msrb.mxu3 %v609_v33  ;;  %676 = vmatpush.msrb.mxu0 %v671_v62  ;;  %v659_v12 = vld [vmem:[#allocation7 + $0x8] sm:$0xff]  ;;  %p1064_p1 = pnand %p1063_p0, %p1211_p5  ;;  %p1069_p7 = por %p1068_p4, %p1067_p3 }
  0x4d   : > { %556 = vmatpush.msrb.mxu2 %v418_v5  ;;  %621 = vmatpush.msrb.mxu1 %v592_v15  ;;  %v666_v5 = vld [vmem:[#allocation7 + $0x40] sm:$0xff] }
  0x4e   : > { %641 = vmatpush.msrb.mxu3 %v608_v35  ;;  %677 = vmatpush.msrb.mxu0 %v670_v63  ;;  %p1065_p2 = pneg %p1064_p1 }
  0x4f   : > { %622 = vmatpush.msrb.mxu1 %v591_v16 }
  0x50   : > { %642 = vmatpush.msrb.mxu3 %v607_v37  ;;  %678 = vmatpush.msrb.mxu0 %v669_v1  ;;  %p1070_p8 = pnand %p1069_p7, %p1065_p2 }
  0x51   : > { %623 = vmatpush.msrb.mxu1 %v590_v19 }
  0x52   : > { %643 = vmatpush.msrb.mxu3 %v606_v39  ;;  %679 = vmatpush.msrb.mxu0 %v668_v3 }
  0x53   : > { %624 = vmatpush.msrb.mxu1 %v589_v22 }
  0x54   : > { %644 = vmatpush.msrb.mxu3 %v605_v41  ;;  %680 = vmatpush.msrb.mxu0 %v667_v4 }
  0x55   : > { %625 = vmatpush.msrb.mxu1 %v588_v27 }
  0x56   : > { %645 = vmatpush.msrb.mxu3 %v604_v42  ;;  %681 = vmatpush.msrb.mxu0 %v666_v5 }
  0x57   : > { %626 = vmatpush.msrb.mxu1 %v587_v29 }
  0x58   : > { %646 = vmatpush.msrb.mxu3 %v603_v43  ;;  %682 = vmatpush.msrb.mxu0 %v665_v6 }
  0x59   : > { %627 = vmatpush.msrb.mxu1 %v586_v31 }
  0x5a   : > { %647 = vmatpush.msrb.mxu3 %v602_v44  ;;  %683 = vmatpush.msrb.mxu0 %v664_v7 }
  0x5b   : > { %628 = vmatpush.msrb.mxu1 %v585_v32 }
  0x5c   : > { %648 = vmatpush.msrb.mxu3 %v601_v45  ;;  %684 = vmatpush.msrb.mxu0 %v663_v8 }
  0x5d   : > { %629 = vmatpush.msrb.mxu1 %v584_v34 }
  0x5e   : > { %649 = vmatpush.msrb.mxu3 %v600_v46  ;;  %685 = vmatpush.msrb.mxu0 %v662_v9 }
  0x5f   : > { %630 = vmatpush.msrb.mxu1 %v583_v36 }
  0x60   : > { %650 = vmatpush.msrb.mxu3 %v599_v47  ;;  %686 = vmatpush.msrb.mxu0 %v661_v10 }
  0x61   : > { %631 = vmatpush.msrb.mxu1 %v582_v38 }
  0x62   : > { %651 = vmatpush.msrb.mxu3 %v598_v48  ;;  %687 = vmatpush.msrb.mxu0 %v660_v11 }
  0x63   : > { %632 = vmatpush.msrb.mxu1 %v581_v40 }
  0x64   : > { %652 = vmatpush.msrb.mxu3 %v597_v49  ;;  %688 = vmatpush.msrb.mxu0 %v659_v12 }
  0x66   : > { %689 = vmatpush.msrb.mxu0 %v658_v13 }
  0x9c   : > { %v375_v20 = vpop.permute.xlu0 %374 }
  0x9d   : > { %vm378_vm1 = vcmp.eq.s32.totalorder %v371_v17, %v375_v20  ;;  %vm376_vm2 = vcmp.eq.s32.totalorder %v369_v14, %v375_v20  ;;  %vm377_vm3 = vcmp.eq.s32.totalorder %v370_v18, %v375_v20  ;;  %v954_v14 = vld [vmem:[%s1324_s5] ss:$0 sm:$0xff] }
  0x9e   : > { %864 = vmatmul.msk.f32.vlgmr.msra.gmra.mxu0 %vm376_vm2, %v1126_v23  ;;  %865 = vmatmul.msk.f32.vlgmr.msra.gmra.mxu1 %vm377_vm3, %v1126_v23  ;;  %v863_v25 = vsel %vm378_vm1, 1.0, %v1127_v24 }
  0x9f   : > { %867 = vmatmul.msk.f32.vlgmr.msra.gmra.mxu3 %vm376_vm2, %v1126_v23  ;;  %866 = vmatmul.msk.f32.vlgmr.msra.gmra.mxu2 %vm457_vm0, %v863_v25 }
  0xa0   : > { %573 = vmatpush.msra.mxu2 %v456_v21  ;;  %v955_v21 = vld [vmem:[%s1326_s7] ss:$0 sm:$0xff] }
  0xa2   : > { %574 = vmatpush.msra.mxu2 %v454_v26 }
  0xa4   : > { %575 = vmatpush.msra.mxu2 %v452_v28 }
  0xa6   : > { %576 = vmatpush.msra.mxu2 %v450_v30 }
  0xa7   : > { %868 = vmatmul.msk.f32.vlgmr.msrb.gmra.mxu2 %vm377_vm3, %v1126_v23 }
  0xa8   : > { %870 = vmatpush.msk.msrb.mxu2 %vm700_vm4, %v695_v2 }
  0xaf   : > { %869 = vmatmul.msk.f32.vlgmr.msra.gmra.mxu2 %vm457_vm0, %v863_v25 }
  0xb7   : > { %871 = vmatmul.msk.f32.vlgmr.msrb.gmra.mxu2 %vm696_vm5, %v694_v0 }
 0x11b   : > { %v478_v52 = vpop.f32.mrf.mxu0  ;;  %v498_v53 = vpop.f32.mrf.mxu1 }
 0x11c   : > { %v499_v54 = vadd.f32 %v498_v53, %v478_v52 }
 0x122   : > { %v518_v55 = vpop.f32.mrf.mxu2  ;;  %v538_v58 = vpop.f32.mrf.mxu3 }
 0x123   : > { %v519_v56 = vadd.f32 %v518_v55, %v499_v54 }
 0x125   : > { %633 = vmatmul.f32.vlgmr.msrb.gmra.mxu1 %v519_v56 }
 0x12a   : > { %v558_v57 = vpop.f32.mrf.mxu2 }
 0x12b   : > { %v559_v59 = vadd.f32 %v558_v57, %v538_v58 }
 0x132   : > { %v578_v60 = vpop.f32.mrf.mxu2 }
 0x133   : > { %v579_v61 = vadd.f32 %v578_v60, %v559_v59 }
 0x135   : > { %653 = vmatmul.f32.vlgmr.msrb.gmra.mxu3 %v579_v61 }
 0x13a   : > { %v721_v20 = vpop.f32.mrf.mxu2 }
 0x1a2   : > { %v634_v15 = vpop.f32.mrf.mxu1 }
 0x1a3   : > { %v635_v16 = vadd.f32 %v954_v14, %v634_v15 }
 0x1b8   : > { %v654_v17 = vpop.f32.mrf.mxu3 }
 0x1b9   : > { %v655_v18 = vadd.f32 %v654_v17, %v635_v16 }
 0x1bb   : > { %v657_v19 = vmax.f32 %v655_v18, 0.0 }
 0x1bd   : > { %690 = vmatmul.f32.vlgmr.msrb.gmra.mxu0 %v657_v19 }
 0x23a   : > { %v691_v22 = vpop.f32.mrf.mxu0 }
 0x23b   : > { %v722_v23 = vadd.f32 %v721_v20, %v691_v22 }
 0x23d   : > { %v728_v24 = vadd.f32 %v955_v21, %v722_v23 }
 0x23f   : > { %729 = vst [vmem:[%s359_s20] sm:$0xff] %v728_v24 }
 0x240   : > { %1073 = shalt.err (!%p1070_p8)
}
 0x241   : > { %888 = dma.vmem_to_hbm [thread:$0]  (%p1211_p5), %s744_s22, 128, %s746_s23, %s731_s9  }
 0x242 PF: > { %p910_p9 = scmp.ge.s32.totalorder %s1116_s30, 2  ;;  %s757_s19 = sand.u32 1, %s1104_s27  }
 0x243   : > { %s758_s25 = scalar_lea.sflag [#allocation4], %s757_s19 }
 0x244   : > { %p901_p10 = pnand %p910_p9, %p1215_p6 }
 0x246   : > { %p902_p11 = pneg %p901_p10 }
 0x248   : > { %1099 = dma.done.wait (%p902_p11), %s758_s25, 128  }
 0x249   : > { %1101 = vsyncadd (%p902_p11), %s758_s25, 4294967168  ;;  %s1337_s2 = sld [smem:[#allocation12_spill]]  ;;  %p20_p12 = scmp.ge.s32.totalorder %s1198_s11, 4  }
 0x24a   : > { %s1338_s27 = smov %s1108_s28  ;;  %s1339_s28 = smov %s1112_s29 }
 0x24b   : > { %s1341_s30 = smov %s1198_s11  ;;  %22 = sbr.rel (!%p20_p12) target bundleno = 8 (0x8), region = 103 }
 0x24f   : > { %s1340_s29 = smov %s1337_s2 }
 0x250   :  { %764 = vsyncpa [#allocation3], 1 }
 0x251   :  { %766 = vsyncpa [#allocation3 + $0x1], 1 }
 0x252   :  { %767 = vsyncpa [#allocation6], 1 }
 0x253   :  { %768 = vsyncpa [#allocation4], 1 }
 0x254   :  { %770 = vsyncpa [#allocation4 + $0x1], 1 }

</bundles_post_ra>
